<compile_context>
chip_gen: v6e
topology: v6e:2x2x1
jax: 0.10.0
libtpu: 0.0.40
codegen_flags: <defaults>
</compile_context>

<pallas_src>
import jax
import jax.numpy as jnp
from jax import lax
from jax.experimental import pallas as pl
from jax.experimental.pallas import tpu as pltpu

H = 64          # LSTM input_size == hidden_size == 64
VOCAB = 50      # synthetic CBOW vocab size


def query_tower_kernel(x_ref, len_ref, wih_ref, whh_ref, b_ref,
                       wproj_ref, bproj_ref, out_ref, xp_ref):
    """x_ref:     [S, Bt, H]  f32  time-major embedded tokens (one batch tile)
       len_ref:   [Bt, 1]     int32
       wih_ref:   [H, 4H]     bf16 (transposed; g-gate columns pre-scaled by 2)
       whh_ref:   [H, 4H]     bf16 (transposed; g-gate columns pre-scaled by 2)
       b_ref:     [1, 4H]     f32  (b_ih + b_hh, g slice pre-scaled by 2)
       wproj_ref: [H, H]      bf16 (transposed), bproj_ref: [1, H] f32
       out_ref:   [Bt, H]     f32
       xp_ref:    [S, Bt, 4H] f32  VMEM scratch (hoisted input projection)
    """
    S, Bt, _ = x_ref.shape
    G = 4 * H

    # ---- hoisted input projection: one MXU call, off the serial critical path ----
    x2 = x_ref[...].reshape(S * Bt, H).astype(jnp.bfloat16)
    xp = jnp.dot(x2, wih_ref[...], preferred_element_type=jnp.float32) + b_ref[...]
    xp_ref[...] = xp.reshape(S, Bt, G)

    whh = whh_ref[...]                                  # bf16 [H, 4H]

    # Hoisted broadcasts (JAX does not CSE broadcast_in_dim inside the loop).
    lens_b = jnp.broadcast_to(len_ref[...], (Bt, H))    # int32 [Bt, H]
    lane = lax.broadcasted_iota(jnp.int32, (Bt, G), 1)
    g_lane = (lane >= 2 * H) & (lane < 3 * H)           # tanh lanes (gate order i,f,g,o)

    h = jnp.zeros((Bt, H), jnp.float32)
    c = jnp.zeros((Bt, H), jnp.float32)

    # Statically unrolled recurrence (S is compile-time; latency-bound loop).
    # TODO(synk): if padding ratio is large at production S, switch to a
    # dynamic max(lengths) bound instead of full unroll.
    for t in range(S):
        gates = xp_ref[t] + jnp.dot(h.astype(jnp.bfloat16), whh,
                                    preferred_element_type=jnp.float32)   # [Bt, 4H] f32
        # g-gate pre-activations already scaled by 2 on the weight side, so a
        # single full-width sigmoid covers all gates: tanh(x) = 2*sigmoid(2x) - 1.
        s = jax.nn.sigmoid(gates)                       # one EUP pass
        act = jnp.where(g_lane, 2.0 * s - 1.0, s)       # PyTorch gate order i,f,g,o
        i_g = act[:, 0 * H:1 * H]
        f_g = act[:, 1 * H:2 * H]
        g_g = act[:, 2 * H:3 * H]
        o_g = act[:, 3 * H:4 * H]
        c_new = f_g * c + i_g * g_g
        h_new = o_g * jnp.tanh(c_new)
        # Emulate pack_padded_sequence: only advance state while t < length[b].
        upd = t < lens_b
        h = jnp.where(upd, h_new, h)
        c = jnp.where(upd, c_new, c)

    # projection: Linear(64, 64)
    out_ref[...] = (jnp.dot(h.astype(jnp.bfloat16), wproj_ref[...],
                            preferred_element_type=jnp.float32)
                    + bproj_ref[...])


def query_tower(token_ids, lengths, params, *, batch_tile=8):
    """token_ids: [B, S] int32, lengths: [B] int32 -> [B, 64] f32."""
    emb_table, w_ih, w_hh, b_ih, b_hh, w_proj, b_proj = (
        params["emb"], params["w_ih"], params["w_hh"], params["b_ih"],
        params["b_hh"], params["w_proj"], params["b_proj"])

    B, S = token_ids.shape

    # Glue kept in XLA: frozen-embedding gather + time-major transpose.
    embedded = jnp.take(emb_table, token_ids, axis=0)            # [B, S, H]
    x = jnp.transpose(embedded, (1, 0, 2)).astype(jnp.float32)   # [S, B, H]

    lens_col = lengths.astype(jnp.int32).reshape(B, 1)

    # Pre-scale the g-gate (cell candidate) rows by 2 so the kernel can use a
    # single sigmoid pass:  tanh(x) = 2 * sigmoid(2x) - 1.
    gscale = jnp.concatenate([
        jnp.ones((2 * H,), jnp.float32),
        2.0 * jnp.ones((H,), jnp.float32),
        jnp.ones((H,), jnp.float32),
    ])                                                   # [4H], order i,f,g,o
    w_ih_s = w_ih * gscale[:, None]
    w_hh_s = w_hh * gscale[:, None]

    # MXU operands in bf16 (f32 accumulation in-kernel); biases stay f32.
    wih_t = jnp.transpose(w_ih_s).astype(jnp.bfloat16)   # [H, 4H]
    whh_t = jnp.transpose(w_hh_s).astype(jnp.bfloat16)   # [H, 4H]
    b_comb = ((b_ih + b_hh) * gscale).astype(jnp.float32).reshape(1, 4 * H)
    wproj_t = jnp.transpose(w_proj).astype(jnp.bfloat16)  # [H, H]
    bproj = b_proj.astype(jnp.float32).reshape(1, H)

    bt = batch_tile if (B % batch_tile == 0) else B
    grid = (B // bt,)

    grid_spec = pltpu.PrefetchScalarGridSpec(
        num_scalar_prefetch=0,
        grid=grid,
        in_specs=[
            pl.BlockSpec((S, bt, H), lambda i: (0, i, 0)),      # x (batch-tiled)
            pl.BlockSpec((bt, 1), lambda i: (i, 0)),            # lengths
            pl.BlockSpec((H, 4 * H), lambda i: (0, 0)),         # W_ih^T (g-scaled)
            pl.BlockSpec((H, 4 * H), lambda i: (0, 0)),         # W_hh^T (g-scaled)
            pl.BlockSpec((1, 4 * H), lambda i: (0, 0)),         # combined bias
            pl.BlockSpec((H, H), lambda i: (0, 0)),             # W_proj^T
            pl.BlockSpec((1, H), lambda i: (0, 0)),             # b_proj
        ],
        out_specs=pl.BlockSpec((bt, H), lambda i: (i, 0)),
        scratch_shapes=[pltpu.VMEM((S, bt, 4 * H), jnp.float32)],
    )

    return pl.pallas_call(
        query_tower_kernel,
        out_shape=jax.ShapeDtypeStruct((B, H), jnp.float32),
        grid_spec=grid_spec,
        compiler_params=pltpu.CompilerParams(
            dimension_semantics=("parallel",)),
    )(x, lens_col, wih_t, whh_t, b_comb, wproj_t, bproj)


def reference_query_tower(token_ids, lengths, params):
    """Pure-JAX f32 reference of the PyTorch forward pass."""
    emb = jnp.take(params["emb"], token_ids, axis=0)   # [B, S, H]
    B, S, _ = emb.shape
    wih_t = params["w_ih"].T
    whh_t = params["w_hh"].T
    b = params["b_ih"] + params["b_hh"]
    h = jnp.zeros((B, H), jnp.float32)
    c = jnp.zeros((B, H), jnp.float32)
    for t in range(S):
        gates = emb[:, t, :] @ wih_t + h @ whh_t + b
        i_g = jax.nn.sigmoid(gates[:, 0 * H:1 * H])
        f_g = jax.nn.sigmoid(gates[:, 1 * H:2 * H])
        g_g = jnp.tanh(gates[:, 2 * H:3 * H])
        o_g = jax.nn.sigmoid(gates[:, 3 * H:4 * H])
        c_new = f_g * c + i_g * g_g
        h_new = o_g * jnp.tanh(c_new)
        mask = (t < lengths)[:, None]
        h = jnp.where(mask, h_new, h)
        c = jnp.where(mask, c_new, c)
    return h @ params["w_proj"].T + params["b_proj"]


def init_params(key):
    ks = jax.random.split(key, 7)
    scale = 0.1
    return {
        "emb": scale * jax.random.normal(ks[0], (VOCAB, H), jnp.float32),
        "w_ih": scale * jax.random.normal(ks[1], (4 * H, H), jnp.float32),
        "w_hh": scale * jax.random.normal(ks[2], (4 * H, H), jnp.float32),
        "b_ih": scale * jax.random.normal(ks[3], (4 * H,), jnp.float32),
        "b_hh": scale * jax.random.normal(ks[4], (4 * H,), jnp.float32),
        "w_proj": scale * jax.random.normal(ks[5], (H, H), jnp.float32),
        "b_proj": scale * jax.random.normal(ks[6], (H,), jnp.float32),
    }


if __name__ == "__main__":
    key = jax.random.PRNGKey(0)
    pkey, tkey, lkey = jax.random.split(key, 3)
    params = init_params(pkey)

    # B=16 so the batch-tiled grid (B_TILE=8 -> grid=(2,)) is actually exercised.
    B, S = 16, 8
    token_ids = jax.random.randint(tkey, (B, S), 0, VOCAB, dtype=jnp.int32)
    lengths = jax.random.randint(lkey, (B,), 1, S + 1, dtype=jnp.int32)  # 1..S

    out = jax.jit(query_tower)(token_ids, lengths, params)
    out = jax.block_until_ready(out)

    ref = reference_query_tower(token_ids, lengths, params)
    assert out.shape == (B, H)
    # MXU operands are bf16 (f32 accumulation), so compare with a bf16-appropriate
    # tolerance against the pure-f32 reference.
    assert jnp.allclose(out, ref, atol=5e-3, rtol=5e-3), \
        f"max diff {jnp.max(jnp.abs(out - ref))}"

    print("KERNEL_OK")
</pallas_src>

<mosaic_0001>
module attributes {stable_mosaic.version = 11 : i64} {
  func.func @query_tower_kernel(%arg0: i32, %arg1: memref<8x8x64xf32, #tpu.memory_space<vmem>>, %arg2: memref<8x1xi32, #tpu.memory_space<vmem>>, %arg3: memref<64x256xbf16, #tpu.memory_space<vmem>>, %arg4: memref<64x256xbf16, #tpu.memory_space<vmem>>, %arg5: memref<1x256xf32, #tpu.memory_space<vmem>>, %arg6: memref<64x64xbf16, #tpu.memory_space<vmem>>, %arg7: memref<1x64xf32, #tpu.memory_space<vmem>>, %arg8: memref<8x64xf32, #tpu.memory_space<vmem>>, %arg9: memref<8x8x256xf32, #tpu.memory_space<vmem>>) attributes {dimension_semantics = [#tpu.dimension_semantics<parallel>], iteration_bounds = array<i64: 2>, scalar_prefetch = 0 : i64, scratch_operands = 1 : i64, tpu.core_type = #tpu.core_type<tc>, window_params = [{transform_indices = @transform_0, window_bounds = array<i64: 8, 8, 64>}, {transform_indices = @transform_1, window_bounds = array<i64: 8, 1>}, {pipeline_mode = #tpu.pipeline_mode<synchronous>, transform_indices = @transform_2, window_bounds = array<i64: 64, 256>}, {pipeline_mode = #tpu.pipeline_mode<synchronous>, transform_indices = @transform_3, window_bounds = array<i64: 64, 256>}, {pipeline_mode = #tpu.pipeline_mode<synchronous>, transform_indices = @transform_4, window_bounds = array<i64: 1, 256>}, {pipeline_mode = #tpu.pipeline_mode<synchronous>, transform_indices = @transform_5, window_bounds = array<i64: 64, 64>}, {pipeline_mode = #tpu.pipeline_mode<synchronous>, transform_indices = @transform_6, window_bounds = array<i64: 1, 64>}, {transform_indices = @transform_7, window_bounds = array<i64: 8, 64>}]} {
    %c0 = arith.constant 0 : index
    %c0_0 = arith.constant 0 : index
    %c0_1 = arith.constant 0 : index
    %0 = vector.load %arg1[%c0, %c0_0, %c0_1] : memref<8x8x64xf32, #tpu.memory_space<vmem>>, vector<8x8x64xf32>
    %1 = vector.shape_cast %0 : vector<8x8x64xf32> to vector<64x64xf32>
    %2 = arith.truncf %1 : vector<64x64xf32> to vector<64x64xbf16>
    %c0_2 = arith.constant 0 : index
    %c0_3 = arith.constant 0 : index
    %3 = vector.load %arg3[%c0_2, %c0_3] : memref<64x256xbf16, #tpu.memory_space<vmem>>, vector<64x256xbf16>
    %cst = arith.constant dense<0.000000e+00> : vector<64x256xf32>
    %4 = tpu.matmul %2, %3, %cst {dimension_numbers = #tpu.dot_dimension_numbers<[1], [0], [0], [1], [0, 0, 1, 1], [], []>} : vector<64x64xbf16>, vector<64x256xbf16>, vector<64x256xf32> -> vector<64x256xf32>
    %c0_4 = arith.constant 0 : index
    %c0_5 = arith.constant 0 : index
    %5 = vector.load %arg5[%c0_4, %c0_5] : memref<1x256xf32, #tpu.memory_space<vmem>>, vector<1x256xf32>
    %6 = vector.broadcast %5 : vector<1x256xf32> to vector<64x256xf32>
    %7 = arith.addf %4, %6 : vector<64x256xf32>
    %8 = vector.shape_cast %7 : vector<64x256xf32> to vector<8x8x256xf32>
    %c0_6 = arith.constant 0 : index
    %c0_7 = arith.constant 0 : index
    %c0_8 = arith.constant 0 : index
    %9 = vector.load %arg9[%c0_6, %c0_7, %c0_8] : memref<8x8x256xf32, #tpu.memory_space<vmem>>, vector<8x8x256xf32>
    tpu.vector_store %arg9[%c0_6, %c0_7, %c0_8], %8 {strides = array<i32>} : memref<8x8x256xf32, #tpu.memory_space<vmem>>, vector<8x8x256xf32>,
    %c0_9 = arith.constant 0 : index
    %c0_10 = arith.constant 0 : index
    %10 = vector.load %arg4[%c0_9, %c0_10] : memref<64x256xbf16, #tpu.memory_space<vmem>>, vector<64x256xbf16>
    %c0_11 = arith.constant 0 : index
    %c0_12 = arith.constant 0 : index
    %11 = vector.load %arg2[%c0_11, %c0_12] : memref<8x1xi32, #tpu.memory_space<vmem>>, vector<8x1xi32>
    %12 = vector.shape_cast %11 : vector<8x1xi32> to vector<8x1xi32>
    %13 = vector.broadcast %12 : vector<8x1xi32> to vector<8x64xi32>
    %14 = tpu.iota {dimensions = array<i32: 1>} : vector<8x256xi32>
    %c128_i32 = arith.constant 128 : i32
    %15 = vector.broadcast %c128_i32 : i32 to vector<8x256xi32>
    %16 = arith.cmpi sge, %14, %15 : vector<8x256xi32>
    %c192_i32 = arith.constant 192 : i32
    %17 = vector.broadcast %c192_i32 : i32 to vector<8x256xi32>
    %18 = arith.cmpi slt, %14, %17 : vector<8x256xi32>
    %19 = arith.andi %16, %18 : vector<8x256xi1>
    %cst_13 = arith.constant 0.000000e+00 : f32
    %20 = vector.broadcast %cst_13 : f32 to vector<8x64xf32>
    %cst_14 = arith.constant 0.000000e+00 : f32
    %21 = vector.broadcast %cst_14 : f32 to vector<8x64xf32>
    %c0_15 = arith.constant 0 : index
    %c0_16 = arith.constant 0 : index
    %c0_17 = arith.constant 0 : index
    %22 = vector.load %arg9[%c0_15, %c0_16, %c0_17] : memref<8x8x256xf32, #tpu.memory_space<vmem>>, vector<1x8x256xf32>
    %23 = vector.shape_cast %22 : vector<1x8x256xf32> to vector<8x256xf32>
    %24 = arith.truncf %20 : vector<8x64xf32> to vector<8x64xbf16>
    %cst_18 = arith.constant dense<0.000000e+00> : vector<8x256xf32>
    %25 = tpu.matmul %24, %10, %cst_18 {dimension_numbers = #tpu.dot_dimension_numbers<[1], [0], [0], [1], [0, 0, 1, 1], [], []>} : vector<8x64xbf16>, vector<64x256xbf16>, vector<8x256xf32> -> vector<8x256xf32>
    %26 = arith.addf %23, %25 : vector<8x256xf32>
    %27 = arith.negf %26 : vector<8x256xf32>
    %28 = math.exp %27 : vector<8x256xf32>
    %cst_19 = arith.constant 1.000000e+00 : f32
    %29 = vector.broadcast %cst_19 : f32 to vector<8x256xf32>
    %30 = arith.addf %29, %28 : vector<8x256xf32>
    %31 = arith.divf %29, %30 : vector<8x256xf32>
    %cst_20 = arith.constant 2.000000e+00 : f32
    %32 = vector.broadcast %cst_20 : f32 to vector<8x256xf32>
    %33 = arith.mulf %32, %31 : vector<8x256xf32>
    %cst_21 = arith.constant 1.000000e+00 : f32
    %34 = vector.broadcast %cst_21 : f32 to vector<8x256xf32>
    %35 = arith.subf %33, %34 : vector<8x256xf32>
    %36 = arith.select %19, %35, %31 : vector<8x256xi1>, vector<8x256xf32>
    %37 = vector.extract_strided_slice %36 {offsets = [0, 0], sizes = [8, 64], strides = [1, 1]} : vector<8x256xf32> to vector<8x64xf32>
    %38 = vector.extract_strided_slice %36 {offsets = [0, 64], sizes = [8, 64], strides = [1, 1]} : vector<8x256xf32> to vector<8x64xf32>
    %39 = vector.extract_strided_slice %36 {offsets = [0, 128], sizes = [8, 64], strides = [1, 1]} : vector<8x256xf32> to vector<8x64xf32>
    %40 = vector.extract_strided_slice %36 {offsets = [0, 192], sizes = [8, 64], strides = [1, 1]} : vector<8x256xf32> to vector<8x64xf32>
    %41 = arith.mulf %38, %21 : vector<8x64xf32>
    %42 = arith.mulf %37, %39 : vector<8x64xf32>
    %43 = arith.addf %41, %42 : vector<8x64xf32>
    %44 = math.tanh %43 : vector<8x64xf32>
    %45 = arith.mulf %40, %44 : vector<8x64xf32>
    %c0_i32 = arith.constant 0 : i32
    %46 = vector.broadcast %c0_i32 : i32 to vector<8x64xi32>
    %47 = arith.cmpi sgt, %13, %46 : vector<8x64xi32>
    %48 = arith.select %47, %45, %20 : vector<8x64xi1>, vector<8x64xf32>
    %49 = arith.select %47, %43, %21 : vector<8x64xi1>, vector<8x64xf32>
    %c1 = arith.constant 1 : index
    %c0_22 = arith.constant 0 : index
    %c0_23 = arith.constant 0 : index
    %50 = vector.load %arg9[%c1, %c0_22, %c0_23] : memref<8x8x256xf32, #tpu.memory_space<vmem>>, vector<1x8x256xf32>
    %51 = vector.shape_cast %50 : vector<1x8x256xf32> to vector<8x256xf32>
    %52 = arith.truncf %48 : vector<8x64xf32> to vector<8x64xbf16>
    %cst_24 = arith.constant dense<0.000000e+00> : vector<8x256xf32>
    %53 = tpu.matmul %52, %10, %cst_24 {dimension_numbers = #tpu.dot_dimension_numbers<[1], [0], [0], [1], [0, 0, 1, 1], [], []>} : vector<8x64xbf16>, vector<64x256xbf16>, vector<8x256xf32> -> vector<8x256xf32>
    %54 = arith.addf %51, %53 : vector<8x256xf32>
    %55 = arith.negf %54 : vector<8x256xf32>
    %56 = math.exp %55 : vector<8x256xf32>
    %cst_25 = arith.constant 1.000000e+00 : f32
    %57 = vector.broadcast %cst_25 : f32 to vector<8x256xf32>
    %58 = arith.addf %57, %56 : vector<8x256xf32>
    %59 = arith.divf %57, %58 : vector<8x256xf32>
    %cst_26 = arith.constant 2.000000e+00 : f32
    %60 = vector.broadcast %cst_26 : f32 to vector<8x256xf32>
    %61 = arith.mulf %60, %59 : vector<8x256xf32>
    %cst_27 = arith.constant 1.000000e+00 : f32
    %62 = vector.broadcast %cst_27 : f32 to vector<8x256xf32>
    %63 = arith.subf %61, %62 : vector<8x256xf32>
    %64 = arith.select %19, %63, %59 : vector<8x256xi1>, vector<8x256xf32>
    %65 = vector.extract_strided_slice %64 {offsets = [0, 0], sizes = [8, 64], strides = [1, 1]} : vector<8x256xf32> to vector<8x64xf32>
    %66 = vector.extract_strided_slice %64 {offsets = [0, 64], sizes = [8, 64], strides = [1, 1]} : vector<8x256xf32> to vector<8x64xf32>
    %67 = vector.extract_strided_slice %64 {offsets = [0, 128], sizes = [8, 64], strides = [1, 1]} : vector<8x256xf32> to vector<8x64xf32>
    %68 = vector.extract_strided_slice %64 {offsets = [0, 192], sizes = [8, 64], strides = [1, 1]} : vector<8x256xf32> to vector<8x64xf32>
    %69 = arith.mulf %66, %49 : vector<8x64xf32>
    %70 = arith.mulf %65, %67 : vector<8x64xf32>
    %71 = arith.addf %69, %70 : vector<8x64xf32>
    %72 = math.tanh %71 : vector<8x64xf32>
    %73 = arith.mulf %68, %72 : vector<8x64xf32>
    %c1_i32 = arith.constant 1 : i32
    %74 = vector.broadcast %c1_i32 : i32 to vector<8x64xi32>
    %75 = arith.cmpi sgt, %13, %74 : vector<8x64xi32>
    %76 = arith.select %75, %73, %48 : vector<8x64xi1>, vector<8x64xf32>
    %77 = arith.select %75, %71, %49 : vector<8x64xi1>, vector<8x64xf32>
    %c2 = arith.constant 2 : index
    %c0_28 = arith.constant 0 : index
    %c0_29 = arith.constant 0 : index
    %78 = vector.load %arg9[%c2, %c0_28, %c0_29] : memref<8x8x256xf32, #tpu.memory_space<vmem>>, vector<1x8x256xf32>
    %79 = vector.shape_cast %78 : vector<1x8x256xf32> to vector<8x256xf32>
    %80 = arith.truncf %76 : vector<8x64xf32> to vector<8x64xbf16>
    %cst_30 = arith.constant dense<0.000000e+00> : vector<8x256xf32>
    %81 = tpu.matmul %80, %10, %cst_30 {dimension_numbers = #tpu.dot_dimension_numbers<[1], [0], [0], [1], [0, 0, 1, 1], [], []>} : vector<8x64xbf16>, vector<64x256xbf16>, vector<8x256xf32> -> vector<8x256xf32>
    %82 = arith.addf %79, %81 : vector<8x256xf32>
    %83 = arith.negf %82 : vector<8x256xf32>
    %84 = math.exp %83 : vector<8x256xf32>
    %cst_31 = arith.constant 1.000000e+00 : f32
    %85 = vector.broadcast %cst_31 : f32 to vector<8x256xf32>
    %86 = arith.addf %85, %84 : vector<8x256xf32>
    %87 = arith.divf %85, %86 : vector<8x256xf32>
    %cst_32 = arith.constant 2.000000e+00 : f32
    %88 = vector.broadcast %cst_32 : f32 to vector<8x256xf32>
    %89 = arith.mulf %88, %87 : vector<8x256xf32>
    %cst_33 = arith.constant 1.000000e+00 : f32
    %90 = vector.broadcast %cst_33 : f32 to vector<8x256xf32>
    %91 = arith.subf %89, %90 : vector<8x256xf32>
    %92 = arith.select %19, %91, %87 : vector<8x256xi1>, vector<8x256xf32>
    %93 = vector.extract_strided_slice %92 {offsets = [0, 0], sizes = [8, 64], strides = [1, 1]} : vector<8x256xf32> to vector<8x64xf32>
    %94 = vector.extract_strided_slice %92 {offsets = [0, 64], sizes = [8, 64], strides = [1, 1]} : vector<8x256xf32> to vector<8x64xf32>
    %95 = vector.extract_strided_slice %92 {offsets = [0, 128], sizes = [8, 64], strides = [1, 1]} : vector<8x256xf32> to vector<8x64xf32>
    %96 = vector.extract_strided_slice %92 {offsets = [0, 192], sizes = [8, 64], strides = [1, 1]} : vector<8x256xf32> to vector<8x64xf32>
    %97 = arith.mulf %94, %77 : vector<8x64xf32>
    %98 = arith.mulf %93, %95 : vector<8x64xf32>
    %99 = arith.addf %97, %98 : vector<8x64xf32>
    %100 = math.tanh %99 : vector<8x64xf32>
    %101 = arith.mulf %96, %100 : vector<8x64xf32>
    %c2_i32 = arith.constant 2 : i32
    %102 = vector.broadcast %c2_i32 : i32 to vector<8x64xi32>
    %103 = arith.cmpi sgt, %13, %102 : vector<8x64xi32>
    %104 = arith.select %103, %101, %76 : vector<8x64xi1>, vector<8x64xf32>
    %105 = arith.select %103, %99, %77 : vector<8x64xi1>, vector<8x64xf32>
    %c3 = arith.constant 3 : index
    %c0_34 = arith.constant 0 : index
    %c0_35 = arith.constant 0 : index
    %106 = vector.load %arg9[%c3, %c0_34, %c0_35] : memref<8x8x256xf32, #tpu.memory_space<vmem>>, vector<1x8x256xf32>
    %107 = vector.shape_cast %106 : vector<1x8x256xf32> to vector<8x256xf32>
    %108 = arith.truncf %104 : vector<8x64xf32> to vector<8x64xbf16>
    %cst_36 = arith.constant dense<0.000000e+00> : vector<8x256xf32>
    %109 = tpu.matmul %108, %10, %cst_36 {dimension_numbers = #tpu.dot_dimension_numbers<[1], [0], [0], [1], [0, 0, 1, 1], [], []>} : vector<8x64xbf16>, vector<64x256xbf16>, vector<8x256xf32> -> vector<8x256xf32>
    %110 = arith.addf %107, %109 : vector<8x256xf32>
    %111 = arith.negf %110 : vector<8x256xf32>
    %112 = math.exp %111 : vector<8x256xf32>
    %cst_37 = arith.constant 1.000000e+00 : f32
    %113 = vector.broadcast %cst_37 : f32 to vector<8x256xf32>
    %114 = arith.addf %113, %112 : vector<8x256xf32>
    %115 = arith.divf %113, %114 : vector<8x256xf32>
    %cst_38 = arith.constant 2.000000e+00 : f32
    %116 = vector.broadcast %cst_38 : f32 to vector<8x256xf32>
    %117 = arith.mulf %116, %115 : vector<8x256xf32>
    %cst_39 = arith.constant 1.000000e+00 : f32
    %118 = vector.broadcast %cst_39 : f32 to vector<8x256xf32>
    %119 = arith.subf %117, %118 : vector<8x256xf32>
    %120 = arith.select %19, %119, %115 : vector<8x256xi1>, vector<8x256xf32>
    %121 = vector.extract_strided_slice %120 {offsets = [0, 0], sizes = [8, 64], strides = [1, 1]} : vector<8x256xf32> to vector<8x64xf32>
    %122 = vector.extract_strided_slice %120 {offsets = [0, 64], sizes = [8, 64], strides = [1, 1]} : vector<8x256xf32> to vector<8x64xf32>
    %123 = vector.extract_strided_slice %120 {offsets = [0, 128], sizes = [8, 64], strides = [1, 1]} : vector<8x256xf32> to vector<8x64xf32>
    %124 = vector.extract_strided_slice %120 {offsets = [0, 192], sizes = [8, 64], strides = [1, 1]} : vector<8x256xf32> to vector<8x64xf32>
    %125 = arith.mulf %122, %105 : vector<8x64xf32>
    %126 = arith.mulf %121, %123 : vector<8x64xf32>
    %127 = arith.addf %125, %126 : vector<8x64xf32>
    %128 = math.tanh %127 : vector<8x64xf32>
    %129 = arith.mulf %124, %128 : vector<8x64xf32>
    %c3_i32 = arith.constant 3 : i32
    %130 = vector.broadcast %c3_i32 : i32 to vector<8x64xi32>
    %131 = arith.cmpi sgt, %13, %130 : vector<8x64xi32>
    %132 = arith.select %131, %129, %104 : vector<8x64xi1>, vector<8x64xf32>
    %133 = arith.select %131, %127, %105 : vector<8x64xi1>, vector<8x64xf32>
    %c4 = arith.constant 4 : index
    %c0_40 = arith.constant 0 : index
    %c0_41 = arith.constant 0 : index
    %134 = vector.load %arg9[%c4, %c0_40, %c0_41] : memref<8x8x256xf32, #tpu.memory_space<vmem>>, vector<1x8x256xf32>
    %135 = vector.shape_cast %134 : vector<1x8x256xf32> to vector<8x256xf32>
    %136 = arith.truncf %132 : vector<8x64xf32> to vector<8x64xbf16>
    %cst_42 = arith.constant dense<0.000000e+00> : vector<8x256xf32>
    %137 = tpu.matmul %136, %10, %cst_42 {dimension_numbers = #tpu.dot_dimension_numbers<[1], [0], [0], [1], [0, 0, 1, 1], [], []>} : vector<8x64xbf16>, vector<64x256xbf16>, vector<8x256xf32> -> vector<8x256xf32>
    %138 = arith.addf %135, %137 : vector<8x256xf32>
    %139 = arith.negf %138 : vector<8x256xf32>
    %140 = math.exp %139 : vector<8x256xf32>
    %cst_43 = arith.constant 1.000000e+00 : f32
    %141 = vector.broadcast %cst_43 : f32 to vector<8x256xf32>
    %142 = arith.addf %141, %140 : vector<8x256xf32>
    %143 = arith.divf %141, %142 : vector<8x256xf32>
    %cst_44 = arith.constant 2.000000e+00 : f32
    %144 = vector.broadcast %cst_44 : f32 to vector<8x256xf32>
    %145 = arith.mulf %144, %143 : vector<8x256xf32>
    %cst_45 = arith.constant 1.000000e+00 : f32
    %146 = vector.broadcast %cst_45 : f32 to vector<8x256xf32>
    %147 = arith.subf %145, %146 : vector<8x256xf32>
    %148 = arith.select %19, %147, %143 : vector<8x256xi1>, vector<8x256xf32>
    %149 = vector.extract_strided_slice %148 {offsets = [0, 0], sizes = [8, 64], strides = [1, 1]} : vector<8x256xf32> to vector<8x64xf32>
    %150 = vector.extract_strided_slice %148 {offsets = [0, 64], sizes = [8, 64], strides = [1, 1]} : vector<8x256xf32> to vector<8x64xf32>
    %151 = vector.extract_strided_slice %148 {offsets = [0, 128], sizes = [8, 64], strides = [1, 1]} : vector<8x256xf32> to vector<8x64xf32>
    %152 = vector.extract_strided_slice %148 {offsets = [0, 192], sizes = [8, 64], strides = [1, 1]} : vector<8x256xf32> to vector<8x64xf32>
    %153 = arith.mulf %150, %133 : vector<8x64xf32>
    %154 = arith.mulf %149, %151 : vector<8x64xf32>
    %155 = arith.addf %153, %154 : vector<8x64xf32>
    %156 = math.tanh %155 : vector<8x64xf32>
    %157 = arith.mulf %152, %156 : vector<8x64xf32>
    %c4_i32 = arith.constant 4 : i32
    %158 = vector.broadcast %c4_i32 : i32 to vector<8x64xi32>
    %159 = arith.cmpi sgt, %13, %158 : vector<8x64xi32>
    %160 = arith.select %159, %157, %132 : vector<8x64xi1>, vector<8x64xf32>
    %161 = arith.select %159, %155, %133 : vector<8x64xi1>, vector<8x64xf32>
    %c5 = arith.constant 5 : index
    %c0_46 = arith.constant 0 : index
    %c0_47 = arith.constant 0 : index
    %162 = vector.load %arg9[%c5, %c0_46, %c0_47] : memref<8x8x256xf32, #tpu.memory_space<vmem>>, vector<1x8x256xf32>
    %163 = vector.shape_cast %162 : vector<1x8x256xf32> to vector<8x256xf32>
    %164 = arith.truncf %160 : vector<8x64xf32> to vector<8x64xbf16>
    %cst_48 = arith.constant dense<0.000000e+00> : vector<8x256xf32>
    %165 = tpu.matmul %164, %10, %cst_48 {dimension_numbers = #tpu.dot_dimension_numbers<[1], [0], [0], [1], [0, 0, 1, 1], [], []>} : vector<8x64xbf16>, vector<64x256xbf16>, vector<8x256xf32> -> vector<8x256xf32>
    %166 = arith.addf %163, %165 : vector<8x256xf32>
    %167 = arith.negf %166 : vector<8x256xf32>
    %168 = math.exp %167 : vector<8x256xf32>
    %cst_49 = arith.constant 1.000000e+00 : f32
    %169 = vector.broadcast %cst_49 : f32 to vector<8x256xf32>
    %170 = arith.addf %169, %168 : vector<8x256xf32>
    %171 = arith.divf %169, %170 : vector<8x256xf32>
    %cst_50 = arith.constant 2.000000e+00 : f32
    %172 = vector.broadcast %cst_50 : f32 to vector<8x256xf32>
    %173 = arith.mulf %172, %171 : vector<8x256xf32>
    %cst_51 = arith.constant 1.000000e+00 : f32
    %174 = vector.broadcast %cst_51 : f32 to vector<8x256xf32>
    %175 = arith.subf %173, %174 : vector<8x256xf32>
    %176 = arith.select %19, %175, %171 : vector<8x256xi1>, vector<8x256xf32>
    %177 = vector.extract_strided_slice %176 {offsets = [0, 0], sizes = [8, 64], strides = [1, 1]} : vector<8x256xf32> to vector<8x64xf32>
    %178 = vector.extract_strided_slice %176 {offsets = [0, 64], sizes = [8, 64], strides = [1, 1]} : vector<8x256xf32> to vector<8x64xf32>
    %179 = vector.extract_strided_slice %176 {offsets = [0, 128], sizes = [8, 64], strides = [1, 1]} : vector<8x256xf32> to vector<8x64xf32>
    %180 = vector.extract_strided_slice %176 {offsets = [0, 192], sizes = [8, 64], strides = [1, 1]} : vector<8x256xf32> to vector<8x64xf32>
    %181 = arith.mulf %178, %161 : vector<8x64xf32>
    %182 = arith.mulf %177, %179 : vector<8x64xf32>
    %183 = arith.addf %181, %182 : vector<8x64xf32>
    %184 = math.tanh %183 : vector<8x64xf32>
    %185 = arith.mulf %180, %184 : vector<8x64xf32>
    %c5_i32 = arith.constant 5 : i32
    %186 = vector.broadcast %c5_i32 : i32 to vector<8x64xi32>
    %187 = arith.cmpi sgt, %13, %186 : vector<8x64xi32>
    %188 = arith.select %187, %185, %160 : vector<8x64xi1>, vector<8x64xf32>
    %189 = arith.select %187, %183, %161 : vector<8x64xi1>, vector<8x64xf32>
    %c6 = arith.constant 6 : index
    %c0_52 = arith.constant 0 : index
    %c0_53 = arith.constant 0 : index
    %190 = vector.load %arg9[%c6, %c0_52, %c0_53] : memref<8x8x256xf32, #tpu.memory_space<vmem>>, vector<1x8x256xf32>
    %191 = vector.shape_cast %190 : vector<1x8x256xf32> to vector<8x256xf32>
    %192 = arith.truncf %188 : vector<8x64xf32> to vector<8x64xbf16>
    %cst_54 = arith.constant dense<0.000000e+00> : vector<8x256xf32>
    %193 = tpu.matmul %192, %10, %cst_54 {dimension_numbers = #tpu.dot_dimension_numbers<[1], [0], [0], [1], [0, 0, 1, 1], [], []>} : vector<8x64xbf16>, vector<64x256xbf16>, vector<8x256xf32> -> vector<8x256xf32>
    %194 = arith.addf %191, %193 : vector<8x256xf32>
    %195 = arith.negf %194 : vector<8x256xf32>
    %196 = math.exp %195 : vector<8x256xf32>
    %cst_55 = arith.constant 1.000000e+00 : f32
    %197 = vector.broadcast %cst_55 : f32 to vector<8x256xf32>
    %198 = arith.addf %197, %196 : vector<8x256xf32>
    %199 = arith.divf %197, %198 : vector<8x256xf32>
    %cst_56 = arith.constant 2.000000e+00 : f32
    %200 = vector.broadcast %cst_56 : f32 to vector<8x256xf32>
    %201 = arith.mulf %200, %199 : vector<8x256xf32>
    %cst_57 = arith.constant 1.000000e+00 : f32
    %202 = vector.broadcast %cst_57 : f32 to vector<8x256xf32>
    %203 = arith.subf %201, %202 : vector<8x256xf32>
    %204 = arith.select %19, %203, %199 : vector<8x256xi1>, vector<8x256xf32>
    %205 = vector.extract_strided_slice %204 {offsets = [0, 0], sizes = [8, 64], strides = [1, 1]} : vector<8x256xf32> to vector<8x64xf32>
    %206 = vector.extract_strided_slice %204 {offsets = [0, 64], sizes = [8, 64], strides = [1, 1]} : vector<8x256xf32> to vector<8x64xf32>
    %207 = vector.extract_strided_slice %204 {offsets = [0, 128], sizes = [8, 64], strides = [1, 1]} : vector<8x256xf32> to vector<8x64xf32>
    %208 = vector.extract_strided_slice %204 {offsets = [0, 192], sizes = [8, 64], strides = [1, 1]} : vector<8x256xf32> to vector<8x64xf32>
    %209 = arith.mulf %206, %189 : vector<8x64xf32>
    %210 = arith.mulf %205, %207 : vector<8x64xf32>
    %211 = arith.addf %209, %210 : vector<8x64xf32>
    %212 = math.tanh %211 : vector<8x64xf32>
    %213 = arith.mulf %208, %212 : vector<8x64xf32>
    %c6_i32 = arith.constant 6 : i32
    %214 = vector.broadcast %c6_i32 : i32 to vector<8x64xi32>
    %215 = arith.cmpi sgt, %13, %214 : vector<8x64xi32>
    %216 = arith.select %215, %213, %188 : vector<8x64xi1>, vector<8x64xf32>
    %217 = arith.select %215, %211, %189 : vector<8x64xi1>, vector<8x64xf32>
    %c7 = arith.constant 7 : index
    %c0_58 = arith.constant 0 : index
    %c0_59 = arith.constant 0 : index
    %218 = vector.load %arg9[%c7, %c0_58, %c0_59] : memref<8x8x256xf32, #tpu.memory_space<vmem>>, vector<1x8x256xf32>
    %219 = vector.shape_cast %218 : vector<1x8x256xf32> to vector<8x256xf32>
    %220 = arith.truncf %216 : vector<8x64xf32> to vector<8x64xbf16>
    %cst_60 = arith.constant dense<0.000000e+00> : vector<8x256xf32>
    %221 = tpu.matmul %220, %10, %cst_60 {dimension_numbers = #tpu.dot_dimension_numbers<[1], [0], [0], [1], [0, 0, 1, 1], [], []>} : vector<8x64xbf16>, vector<64x256xbf16>, vector<8x256xf32> -> vector<8x256xf32>
    %222 = arith.addf %219, %221 : vector<8x256xf32>
    %223 = arith.negf %222 : vector<8x256xf32>
    %224 = math.exp %223 : vector<8x256xf32>
    %cst_61 = arith.constant 1.000000e+00 : f32
    %225 = vector.broadcast %cst_61 : f32 to vector<8x256xf32>
    %226 = arith.addf %225, %224 : vector<8x256xf32>
    %227 = arith.divf %225, %226 : vector<8x256xf32>
    %cst_62 = arith.constant 2.000000e+00 : f32
    %228 = vector.broadcast %cst_62 : f32 to vector<8x256xf32>
    %229 = arith.mulf %228, %227 : vector<8x256xf32>
    %cst_63 = arith.constant 1.000000e+00 : f32
    %230 = vector.broadcast %cst_63 : f32 to vector<8x256xf32>
    %231 = arith.subf %229, %230 : vector<8x256xf32>
    %232 = arith.select %19, %231, %227 : vector<8x256xi1>, vector<8x256xf32>
    %233 = vector.extract_strided_slice %232 {offsets = [0, 0], sizes = [8, 64], strides = [1, 1]} : vector<8x256xf32> to vector<8x64xf32>
    %234 = vector.extract_strided_slice %232 {offsets = [0, 64], sizes = [8, 64], strides = [1, 1]} : vector<8x256xf32> to vector<8x64xf32>
    %235 = vector.extract_strided_slice %232 {offsets = [0, 128], sizes = [8, 64], strides = [1, 1]} : vector<8x256xf32> to vector<8x64xf32>
    %236 = vector.extract_strided_slice %232 {offsets = [0, 192], sizes = [8, 64], strides = [1, 1]} : vector<8x256xf32> to vector<8x64xf32>
    %237 = arith.mulf %234, %217 : vector<8x64xf32>
    %238 = arith.mulf %233, %235 : vector<8x64xf32>
    %239 = arith.addf %237, %238 : vector<8x64xf32>
    %240 = math.tanh %239 : vector<8x64xf32>
    %241 = arith.mulf %236, %240 : vector<8x64xf32>
    %c7_i32 = arith.constant 7 : i32
    %242 = vector.broadcast %c7_i32 : i32 to vector<8x64xi32>
    %243 = arith.cmpi sgt, %13, %242 : vector<8x64xi32>
    %244 = arith.select %243, %241, %216 : vector<8x64xi1>, vector<8x64xf32>
    %245 = arith.truncf %244 : vector<8x64xf32> to vector<8x64xbf16>
    %c0_64 = arith.constant 0 : index
    %c0_65 = arith.constant 0 : index
    %246 = vector.load %arg6[%c0_64, %c0_65] : memref<64x64xbf16, #tpu.memory_space<vmem>>, vector<64x64xbf16>
    %cst_66 = arith.constant dense<0.000000e+00> : vector<8x64xf32>
    %247 = tpu.matmul %245, %246, %cst_66 {dimension_numbers = #tpu.dot_dimension_numbers<[1], [0], [0], [1], [0, 0, 1, 1], [], []>} : vector<8x64xbf16>, vector<64x64xbf16>, vector<8x64xf32> -> vector<8x64xf32>
    %c0_67 = arith.constant 0 : index
    %c0_68 = arith.constant 0 : index
    %248 = vector.load %arg7[%c0_67, %c0_68] : memref<1x64xf32, #tpu.memory_space<vmem>>, vector<1x64xf32>
    %249 = vector.broadcast %248 : vector<1x64xf32> to vector<8x64xf32>
    %250 = arith.addf %247, %249 : vector<8x64xf32>
    %c0_69 = arith.constant 0 : index
    %c0_70 = arith.constant 0 : index
    %251 = vector.load %arg8[%c0_69, %c0_70] : memref<8x64xf32, #tpu.memory_space<vmem>>, vector<8x64xf32>
    tpu.vector_store %arg8[%c0_69, %c0_70], %250 {strides = array<i32>} : memref<8x64xf32, #tpu.memory_space<vmem>>, vector<8x64xf32>,
    return
  }
  func.func @transform_0(%arg0: i32) -> (i32, i32, i32) {
    %c0_i32 = arith.constant 0 : i32
    %c0_i32_0 = arith.constant 0 : i32
    %c0_i32_1 = arith.constant 0 : i32
    return %c0_i32, %arg0, %c0_i32_0 : i32, i32, i32
  }
  func.func @transform_1(%arg0: i32) -> (i32, i32) {
    %c0_i32 = arith.constant 0 : i32
    %c0_i32_0 = arith.constant 0 : i32
    return %arg0, %c0_i32 : i32, i32
  }
  func.func @transform_2(%arg0: i32) -> (i32, i32) {
    %c0_i32 = arith.constant 0 : i32
    %c0_i32_0 = arith.constant 0 : i32
    %c0_i32_1 = arith.constant 0 : i32
    return %c0_i32, %c0_i32_0 : i32, i32
  }
  func.func @transform_3(%arg0: i32) -> (i32, i32) {
    %c0_i32 = arith.constant 0 : i32
    %c0_i32_0 = arith.constant 0 : i32
    %c0_i32_1 = arith.constant 0 : i32
    return %c0_i32, %c0_i32_0 : i32, i32
  }
  func.func @transform_4(%arg0: i32) -> (i32, i32) {
    %c0_i32 = arith.constant 0 : i32
    %c0_i32_0 = arith.constant 0 : i32
    %c0_i32_1 = arith.constant 0 : i32
    return %c0_i32, %c0_i32_0 : i32, i32
  }
  func.func @transform_5(%arg0: i32) -> (i32, i32) {
    %c0_i32 = arith.constant 0 : i32
    %c0_i32_0 = arith.constant 0 : i32
    %c0_i32_1 = arith.constant 0 : i32
    return %c0_i32, %c0_i32_0 : i32, i32
  }
  func.func @transform_6(%arg0: i32) -> (i32, i32) {
    %c0_i32 = arith.constant 0 : i32
    %c0_i32_0 = arith.constant 0 : i32
    %c0_i32_1 = arith.constant 0 : i32
    return %c0_i32, %c0_i32_0 : i32, i32
  }
  func.func @transform_7(%arg0: i32) -> (i32, i32) {
    %c0_i32 = arith.constant 0 : i32
    %c0_i32_0 = arith.constant 0 : i32
    return %arg0, %c0_i32 : i32, i32
  }
}

</mosaic_0001>

<bundles_post_ra>
// kernel: query_tower.1
= control target key start
LH: loop header
LB: loop body
LE: loop exit
PB: predicated region body
PF: predicated region fallthrough
CT: control target
= control target key end

     0   :  { %12 = vsyncpa [#allocation5], 0  ;;  %s2178_s0 = inlined_call_operand.vmem [shape: f32[8,16,64], index: 0, kind: input, shape index: {}]   ;;  %s2179_s1 = inlined_call_operand.vmem [shape: s32[16,1], index: 1, kind: input, shape index: {}]   ;;  %s2180_s2 = inlined_call_operand.vmem [shape: bf16[64,256], index: 2, kind: input, shape index: {}]   ;;  %s2181_s3 = inlined_call_operand.vmem [shape: bf16[64,256], index: 3, kind: input, shape index: {}]   ;;  %s2182_s4 = inlined_call_operand.vmem [shape: f32[1,256], index: 4, kind: input, shape index: {}]   ;;  %s2183_s5 = inlined_call_operand.vmem [shape: bf16[64,64], index: 5, kind: input, shape index: {}]   ;;  %s2184_s6 = inlined_call_operand.vmem [shape: f32[1,64], index: 6, kind: input, shape index: {}]   ;;  %s2185_s7 = inlined_call_operand.hbm [shape: f32[16,64], index: 7, kind: output, shape index: {}]  }
   0x1   :  { %14 = vsyncpa [#allocation5 + $0x1], 0  ;;  %s1783_s24 = smov 0   ;;  %s1785_s25 = smov 0  }
   0x2   :  { %s1787_s26 = smov 0   ;;  %s1789_s27 = smov 0  }
   0x3 LB: > { %s1804_s28 = sadd.s32 4294967295, %s1736_s27   ;;  %s1429_s29 = sadd.s32 4294967294, %s1736_s27   ;;  %s1736_s27 = sphi %s1789_s27, %s2191_s27   ;;  %s1732_s26 = sphi %s1787_s26, %s2190_s26   ;;  %s1728_s25 = sphi %s1785_s25, %s2189_s25   ;;  %s1724_s24 = sphi %s1783_s24, %s2188_s24  }
   0x4   : > { %s1808_s30 = sadd.s32 1, %s1736_s27   ;;  %s27_s8 = sadd.s32 1, %s1732_s26 }
   0x5   : > { %s24_s9 = ssub.s32 %s1736_s27, %s1808_s30  ;;  %p34_p0 = scmp.ne.s32.totalorder %s1732_s26, %s1728_s25 }
   0x6   : > { %p25_p1 = scmp.eq.s32.totalorder %s24_s9, 0  ;;  %p35_p2 = scmp.eq.s32.totalorder %s1736_s27, 0 }
   0x7   : > { %p195_p3 = scmp.eq.s32.totalorder %s1804_s28, 1  ;;  %p200_p4 = scmp.ne.s32.totalorder %s1728_s25, %s1724_s24 }
   0x8   : > { %s1820_s10 = scalar_select %p25_p1, %s1732_s26, %s27_s8  }
   0x9   : > { %p36_p5 = por %p35_p2, %p34_p0  ;;  %p1822_p6 = por %p195_p3, %p34_p0 }
   0xa   : > { %p201_p7 = scmp.eq.s32.totalorder %s1429_s29, 1  ;;  %p1431_p9 = scmp.ge.s32.totalorder %s1736_s27, 2 }
   0xc   : > { %p1826_p8 = por %p201_p7, %p200_p4  ;;  %232 = sbr.rel (%p1431_p9) target bundleno = 25 (0x19), region = 36 }
  0x11   : > { %235 = sbr.rel (!%p36_p5) target bundleno = 25 (0x19), region = 40  ;;  %s237_s13 = sand.u32 (%p36_p5), 1, %s1732_s26  }
  0x12   : > { %s1433_s14 = sshll.u32 (%p36_p5), %s1736_s27, 3  ;;  %s1432_s15 = sshll.u32 (%p36_p5), %s237_s13, 6 }
  0x13   : > { %s241_s18 = scalar_lea.vmem (%p36_p5), %s2178_s0, %s1433_s14  ;;  %s239_s19 = scalar_lea.vmem (%p36_p5), [#allocation3], %s1432_s15 }
  0x14   : > { %v284_v0 = vld [vmem:[%s241_s18] sm:$0xff] (%p36_p5)  ;;  %v286_v1 = vld [vmem:[%s241_s18 + $0x10] sm:$0xff] (%p36_p5) }
  0x15   : > { %v288_v2 = vld [vmem:[%s241_s18 + $0x20] sm:$0xff] (%p36_p5)  ;;  %285 = vst [vmem:[%s239_s19] sm:$0xff] (%p36_p5), %v284_v0  ;;  %287 = vst [vmem:[%s239_s19 + $0x8] sm:$0xff] (%p36_p5), %v286_v1  ;;  %v290_v3 = vld [vmem:[%s241_s18 + $0x30] sm:$0xff] (%p36_p5) }
  0x16   : > { %289 = vst [vmem:[%s239_s19 + $0x10] sm:$0xff] %v288_v2  ;;  %v292_v4 = vld [vmem:[%s241_s18 + $0x40] sm:$0xff]  ;;  %v294_v5 = vld [vmem:[%s241_s18 + $0x50] sm:$0xff]  ;;  %291 = vst [vmem:[%s239_s19 + $0x18] sm:$0xff] %v290_v3 }
  0x17   : > { %293 = vst [vmem:[%s239_s19 + $0x20] sm:$0xff] %v292_v4  ;;  %295 = vst [vmem:[%s239_s19 + $0x28] sm:$0xff] %v294_v5  ;;  %v296_v6 = vld [vmem:[%s241_s18 + $0x60] sm:$0xff]  ;;  %v298_v7 = vld [vmem:[%s241_s18 + $0x70] sm:$0xff] }
  0x18   : > { %297 = vst [vmem:[%s239_s19 + $0x30] sm:$0xff] %v296_v6  ;;  %299 = vst [vmem:[%s239_s19 + $0x38] sm:$0xff] %v298_v7 }
  0x19 PF: > { %p1434_p10 = scmp.ge.s32.totalorder %s1736_s27, 1  ;;  %p311_p11 = scmp.lt.s32.totalorder %s1736_s27, 3 }
  0x1b   : > { %p312_p12 = pnand %p1434_p10, %p311_p11 }
  0x1c   : > { %s1859_s14 = sand.u32 (!%p312_p12), 1, %s1728_s25   ;;  %p353_p13 = scmp.lt.s32.totalorder (!%p312_p12), %s1804_s28, 1 }
  0x1d   : > { %315 = sbr.rel (%p312_p12) target bundleno = 4159 (0x103f), region = 82  ;;  %s1435_s23 = sshll.u32 (!%p312_p12), %s1859_s14, 6 }
  0x1e   : > { %s1916_s15 = scalar_lea.vmem (!%p312_p12), [#allocation3], %s1435_s23  ;;  %s1739_s22 = smov (!%p312_p12), 64  }
  0x1f   : > { %s1742_s23 = smov (!%p312_p12), [#allocation4]  }
  0x20   : > { %s1680_s16 = sshll.u32 (!%p312_p12), %s1742_s23, 4  ;;  %s1681_s16 = int_to_ptr.vmem [resolvable:$false] %s1680_s16 }
  0x22   : > { %v1568_v8 = vld [vmem:[%s2180_s2 + $0x34] ss:$8 sps:$4 sm:$0xff]   ;;  %v1738_v10 = vmov 0   ;;  %v1572_v11 = vld [vmem:[%s2180_s2 + $0x30] ss:$8 sps:$4 sm:$0xff]   ;;  %v358_v25 = vld [vmem:[%s1916_s15] sm:$0xff]  ;;  %v380_v28 = vlaneseq }
  0x23   : > { %v1846_v9 = vld [vmem:[%s2181_s3 + $0x34] ss:$8 sps:$4 sm:$0xff]   ;;  %475 = vmatprep.mubr.bf16.mxu0 %v1738_v10  ;;  %630 = vmatprep.mubr.bf16.mxu1 %v1738_v10  ;;  %v1856_v12 = vld [vmem:[%s2181_s3 + $0x30] ss:$8 sps:$4 sm:$0xff]   ;;  %v1574_v13 = vld [vmem:[%s2180_s2 + $0x24] ss:$8 sps:$4 sm:$0xff]  }
  0x24   : > { %451 = vmatprep.subr.bf16.mxu0 %v1568_v8  ;;  %1567 = vset.pattern.permute.xlu0 %v1738_v10  ;;  %v1870_v14 = vld [vmem:[%s2181_s3 + $0x24] ss:$8 sps:$4 sm:$0xff]   ;;  %v1578_v15 = vld [vmem:[%s2180_s2 + $0x20] ss:$8 sps:$4 sm:$0xff]   ;;  %v1580_v17 = vld [vmem:[%s2180_s2 + $0x14] ss:$8 sps:$4 sm:$0xff]  }
  0x25   : > { %606 = vmatprep.subr.bf16.mxu1 %v1846_v9  ;;  %452 = vmatpush1.bf16.msra.mxu0 %v1572_v11  ;;  %v1878_v16 = vld [vmem:[%s2181_s3 + $0x20] ss:$8 sps:$4 sm:$0xff]   ;;  %v1888_v18 = vld [vmem:[%s2181_s3 + $0x14] ss:$8 sps:$4 sm:$0xff]   ;;  %v1584_v19 = vld [vmem:[%s2180_s2 + $0x10] ss:$8 sps:$4 sm:$0xff]  }
  0x26   : > { %607 = vmatpush1.bf16.msra.mxu1 %v1856_v12  ;;  %453 = vmatprep.subr.bf16.mxu0 %v1574_v13  ;;  %v1896_v20 = vld [vmem:[%s2181_s3 + $0x10] ss:$8 sps:$4 sm:$0xff]   ;;  %v1586_v21 = vld [vmem:[%s2180_s2 + $0x4] ss:$8 sps:$4 sm:$0xff]   ;;  %v1590_v23 = vld [vmem:[%s2180_s2] ss:$8 sps:$4 sm:$0xff]  }
  0x27   : > { %608 = vmatprep.subr.bf16.mxu1 %v1870_v14  ;;  %v1906_v22 = vld [vmem:[%s2181_s3 + $0x4] ss:$8 sps:$4 sm:$0xff]   ;;  %v1914_v24 = vld [vmem:[%s2181_s3] ss:$8 sps:$4 sm:$0xff]   ;;  %vm430_vm0 = vcmask 523264   ;;  %v381_v29 = vshrl.u32 %v380_v28, 7 }
  0x28   : > { %v359_v26 = vld [vmem:[%s1916_s15 + $0x8] sm:$0xff]  ;;  %v378_v31 = vld [vmem:[%s2182_s4] sm:$0x3]  ;;  %v545_v51 = vand.u32 127, %v380_v28  ;;  %s354_s17 = scalar_select %p353_p13, %s1804_s28, 1  ;;  %vm1741_vm9 = vmmov 0  }
  0x29   : > { %454 = vmatpush1.bf16.msra.mxu0 %v1578_v15  ;;  %v366_v27 = vpack.c.bf16 %v359_v26, %v358_v25  ;;  %v382_v30 = vsub.s32 0, %v381_v29  ;;  %v386_v32 = vsub.s32 1, %v381_v29 }
  0x2a   : > { %609 = vmatpush1.bf16.msra.mxu1 %v1878_v16  ;;  %455 = vmatprep.subr.bf16.mxu0 %v1580_v17  ;;  %v1955_v52 = vadd.s32 128, %v545_v51  ;;  %s1437_s18 = sshll.u32 %s354_s17, 3  ;;  %s1682_s17 = scalar_lea.vmem %s1681_s16, 256 }
  0x2b   : > { %610 = vmatprep.subr.bf16.mxu1 %v1888_v18  ;;  %v1948_v33 = vrot.slane %v378_v31, %v382_v30  ;;  %v1950_v34 = vrot.slane %v378_v31, %v386_v32  ;;  %s356_s21 = scalar_lea.vmem %s2179_s1, %s1437_s18  ;;  %s1436_s18 = sshll.u32 %s1859_s14, 3 }
  0x2c   : > { %vm550_vm1 = vcmp.lt.s32.totalorder %v1955_v52, 192  ;;  %v540_v59 = vld [vmem:[%s356_s21] sm:$0xff]  ;;  %v1594_v52 = vld [vmem:[%s2183_s5 + $0x8] sm:$0xff]   ;;  %s1504_s21 = sshll.u32 %s1804_s28, 7  ;;  %s352_s29 = scalar_lea.vmem [#allocation4], %s1436_s18 }
  0x2d   : > { %456 = vmatpush1.bf16.msra.mxu0 %v1584_v19  ;;  %s1352_s8 = sshll.u32 %s352_s29, 4  ;;  %s2136_s8 = int_to_ptr.vmem [resolvable:$true] %s1352_s8 }
  0x2e   : > { %611 = vmatpush1.bf16.msra.mxu1 %v1896_v20  ;;  %457 = vmatprep.subr.bf16.mxu0 %v1586_v21  ;;  %s1676_s28 = scalar_lea.vmem %s2136_s8, 128  ;;  %p1683_p3 = scmp.lt.s32.totalorder %s2136_s8, %s1681_s16 }
  0x2f   : > { %612 = vmatprep.subr.bf16.mxu1 %v1906_v22  ;;  %p1677_p0 = scmp.ne.s32.totalorder %s2136_s8, %s1676_s28  ;;  %p1684_p4 = scmp.lt.s32.totalorder %s1682_s17, %s1676_s28 }
  0x31   : > { %458 = vmatpush1.bf16.msra.mxu0 %v1590_v23  ;;  %p1678_p1 = pnand %p1677_p0, %p1822_p6  ;;  %p1685_p5 = por %p1684_p4, %p1683_p3 }
  0x32   : > { %613 = vmatpush1.bf16.msra.mxu1 %v1914_v24  ;;  %772 = vmatprep.subr.bf16.mxu0 %v1846_v9 }
  0x33   : > { %689 = vmatprep.subr.bf16.mxu1 %v1846_v9  ;;  %p1679_p2 = pneg %p1678_p1 }
  0x34   : > { %1446 = vmatmul.mubr.msk.bf16.vlgmr.msra.gmra.mxu0 %vm430_vm0, %v366_v27 }
  0x35   : > { %631 = vmatmul.mubr.bf16.vlgmr.msra.gmra.mxu1 %v1738_v10  ;;  %773 = vmatpush1.bf16.msra.mxu0 %v1856_v12  ;;  %p1686_p7 = pnand %p1685_p5, %p1679_p2 }
  0x36   : > { %690 = vmatpush1.bf16.msra.mxu1 %v1856_v12  ;;  %713 = vmatprep.mubr.bf16.mxu1 %v1738_v10 }
  0x37   : > { %691 = vmatprep.subr.bf16.mxu1 %v1870_v14  ;;  %485 = vmatprep.mubr.bf16.mxu0 %v1738_v10 }
  0x38   : > { %774 = vmatprep.subr.bf16.mxu0 %v1870_v14 }
  0x39   : > { %775 = vmatpush1.bf16.msra.mxu0 %v1878_v16 }
  0x3a   : > { %692 = vmatpush1.bf16.msra.mxu1 %v1878_v16  ;;  %776 = vmatprep.subr.bf16.mxu0 %v1888_v18 }
  0x3b   : > { %693 = vmatprep.subr.bf16.mxu1 %v1888_v18 }
  0x3d   : > { %777 = vmatpush1.bf16.msra.mxu0 %v1896_v20 }
  0x3e   : > { %694 = vmatpush1.bf16.msra.mxu1 %v1896_v20  ;;  %778 = vmatprep.subr.bf16.mxu0 %v1906_v22 }
  0x3f   : > { %695 = vmatprep.subr.bf16.mxu1 %v1906_v22 }
  0x41   : > { %779 = vmatpush1.bf16.msra.mxu0 %v1914_v24 }
  0x42   : > { %696 = vmatpush1.bf16.msra.mxu1 %v1914_v24  ;;  %938 = vmatprep.subr.bf16.mxu0 %v1846_v9 }
  0x43   : > { %855 = vmatprep.subr.bf16.mxu1 %v1846_v9 }
  0xf4   : > { %v477_v35 = vpop.f32.mrf.mxu0 }
  0xf5   : > { %v632_v36 = vpop.f32.mrf.mxu1  ;;  %v478_v37 = vadd.f32 %v477_v35, %v1948_v33 }
  0xf6   : > { %v479_v38 = vpop.f32.mrf.mxu0 }
  0xf7   : > { %v634_v39 = vpop.f32.mrf.mxu1  ;;  %v639_v40 = vadd.f32 %v632_v36, %v478_v37  ;;  %v480_v41 = vadd.f32 %v479_v38, %v1950_v34 }
  0xf8   : > { %v481_v6 = vpop.f32.mrf.mxu0 }
  0xf9   : > { %v636_v42 = vpop.f32.mrf.mxu1  ;;  %v640_v43 = vadd.f32 %v634_v39, %v480_v41  ;;  %v1458_v44 = vmul.f32 -1.442695, %v639_v40  ;;  %v482_v8 = vadd.f32 %v481_v6, %v1948_v33  ;;  %v360_v39 = vld [vmem:[%s1916_s15 + $0x10] sm:$0xff]  ;;  %v361_v40 = vld [vmem:[%s1916_s15 + $0x18] sm:$0xff] }
  0xfa   : > { %v483_v7 = vpop.f32.mrf.mxu0  ;;  %v367_v41 = vpack.c.bf16 %v361_v40, %v360_v39  ;;  %v362_v42 = vld [vmem:[%s1916_s15 + $0x20] sm:$0xff] }
  0xfb   : > { %v637_v45 = vpop.f32.mrf.mxu1  ;;  %v1459_v46 = vmul.f32 -1.442695, %v640_v43  ;;  %v484_v13 = vadd.f32 %v483_v7, %v1950_v34  ;;  %v363_v43 = vld [vmem:[%s1916_s15 + $0x28] sm:$0xff] }
  0xfc   : > { %1447 = vmatmul.mubr.msk.bf16.gmra.mxu0 %vm430_vm0, %v367_v41  ;;  %v364_v45 = vld [vmem:[%s1916_s15 + $0x30] sm:$0xff] }
  0xfd   : > { %1596 = vpow2.f32 %v1459_v46  ;;  %495 = vmatprep.mubr.bf16.mxu0 %v1738_v10  ;;  %v365_v46 = vld [vmem:[%s1916_s15 + $0x38] sm:$0xff]  ;;  %s2134_s15 = scalar_lea.hbm %s2185_s7, %s1504_s21 }
  0xfe   : > { %1598 = vpow2.f32 %v1458_v44  ;;  %v368_v44 = vpack.c.bf16 %v363_v43, %v362_v42 }
 0x104   : > { %1448 = vmatmul.mubr.msk.bf16.gmra.mxu0 %vm430_vm0, %v368_v44 }
 0x105   : > { %505 = vmatprep.mubr.bf16.mxu0 %v1738_v10 }
 0x10a   : > { %v1597_v47 = vpop.eup %1596 }
 0x10b   : > { %v1599_v48 = vpop.eup %1598  ;;  %v648_v49 = vadd.f32 1.0, %v1597_v47  ;;  %v369_v47 = vpack.c.bf16 %v365_v46, %v364_v45 }
 0x10c   : > { %v647_v50 = vadd.f32 1.0, %v1599_v48 }
 0x10d   : > { %1600 = vrcp.f32 %v648_v49  ;;  %1449 = vmatmul.mubr.msk.bf16.gmra.mxu0 %vm430_vm0, %v369_v47 }
 0x10e   : > { %1602 = vrcp.f32 %v647_v50  ;;  %796 = vmatprep.mubr.bf16.mxu0 %v1738_v10 }
 0x11a   : > { %v1601_v53 = vpop.eup %1600 }
 0x11b   : > { %v654_v54 = vmul.f32 2.0, %v1601_v53  ;;  %v1603_v56 = vpop.eup %1602 }
 0x11c   : > { %v659_v60 = vmul.f32 0.0, %v1603_v56 }
 0x11d   : > { %v1461_v55 = vadd.f32 -1.0, %v654_v54 }
 0x11f   : > { %v658_v57 = vsel %vm550_vm1, %v1461_v55, %v1601_v53 }
 0x120   : > { %v660_v58 = vmul.f32 %v1603_v56, %v658_v57 }
 0x122   : > { %662 = vrot.lane.b32.xlu0 %v660_v58, %s1739_s22 }
 0x126   : > { %542 = vperm.xlu0 %1567, %v540_v59  }
 0x194   : > { %v663_v61 = vpop.permute.xlu0 %662 }
 0x195   : > { %v665_v62 = vadd.f32 %v663_v61, %v659_v60 }
 0x197   : > { %1604 = vtanh.f32 %v665_v62 }
 0x1a1   : > { %v1965_v63 = vpop.permute.xlu0 %542 }
 0x1a2   : > { %vm668_vm2 = vcmp.gt.s32.totalorder %v1965_v63, 0  ;;  %vm751_vm3 = vcmp.gt.s32.totalorder %v1965_v63, 1  ;;  %vm834_vm4 = vcmp.gt.s32.totalorder %v1965_v63, 2  ;;  %vm917_vm5 = vcmp.gt.s32.totalorder %v1965_v63, 3 }
 0x1a3   : > { %v1968_v0 = vsel %vm668_vm2, %v665_v62, 0.0  ;;  %vm1000_vm6 = vcmp.gt.s32.totalorder %v1965_v63, 4  ;;  %vm1083_vm7 = vcmp.gt.s32.totalorder %v1965_v63, 5  ;;  %vm1166_vm8 = vcmp.gt.s32.totalorder %v1965_v63, 6 }
 0x1a4   : > { %v1605_v1 = vpop.eup %1604  ;;  %vm1249_vm10 = vcmp.gt.s32.totalorder %v1965_v63, 7 }
 0x1a5   : > { %v667_v2 = vmul.f32 %v1605_v1, %v658_v57 }
 0x1a7   : > { %v1970_v3 = vsel %vm668_vm2, %v667_v2, 0.0 }
 0x1a8   : > { %v674_v4 = vpack.c.bf16 %v1970_v3, %v1970_v3 }
 0x1aa   : > { %676 = vrot.lane.b32.xlu1 %v674_v4, %s1739_s22 }
 0x1bc   : > { %v487_v58 = vpop.f32.mrf.mxu0 }
 0x1bd   : > { %v488_v7 = vadd.f32 %v487_v58, %v1948_v33 }
 0x1be   : > { %v489_v59 = vpop.f32.mrf.mxu0 }
 0x1c0   : > { %v491_v60 = vpop.f32.mrf.mxu0 }
 0x1c1   : > { %v492_v47 = vadd.f32 %v491_v60, %v1948_v33 }
 0x1c2   : > { %v493_v61 = vpop.f32.mrf.mxu0 }
 0x1c4   : > { %v2017_v62 = vpop.f32.mrf.mxu0 }
 0x21c   : > { %v677_v5 = vpop.permute.xlu1 %676 }
 0x21d   : > { %1462 = vmatmul.mubr.msk.bf16.vlgmr.msra.gmra.mxu1 %vm430_vm0, %v677_v5 }
 0x21e   : > { %856 = vmatpush1.bf16.msra.mxu1 %v1856_v12  ;;  %879 = vmatprep.mubr.bf16.mxu1 %v1738_v10 }
 0x21f   : > { %857 = vmatprep.subr.bf16.mxu1 %v1870_v14 }
 0x222   : > { %858 = vmatpush1.bf16.msra.mxu1 %v1878_v16 }
 0x223   : > { %859 = vmatprep.subr.bf16.mxu1 %v1888_v18 }
 0x226   : > { %860 = vmatpush1.bf16.msra.mxu1 %v1896_v20 }
 0x227   : > { %861 = vmatprep.subr.bf16.mxu1 %v1906_v22 }
 0x22a   : > { %862 = vmatpush1.bf16.msra.mxu1 %v1914_v24 }
 0x22b   : > { %1021 = vmatprep.subr.bf16.mxu1 %v1846_v9 }
 0x2dd   : > { %v715_v11 = vpop.f32.mrf.mxu1 }
 0x2de   : > { %v722_v15 = vadd.f32 %v715_v11, %v482_v8  ;;  %v490_v11 = vadd.f32 %v489_v59, %v1950_v34 }
 0x2df   : > { %v717_v17 = vpop.f32.mrf.mxu1 }
 0x2e0   : > { %v723_v19 = vadd.f32 %v717_v17, %v484_v13  ;;  %v1463_v21 = vmul.f32 -1.442695, %v722_v15 }
 0x2e1   : > { %v719_v23 = vpop.f32.mrf.mxu1 }
 0x2e2   : > { %v1464_v25 = vmul.f32 -1.442695, %v723_v19 }
 0x2e3   : > { %v720_v26 = vpop.f32.mrf.mxu1 }
 0x2e4   : > { %1606 = vpow2.f32 %v1464_v25 }
 0x2e5   : > { %1608 = vpow2.f32 %v1463_v21 }
 0x2f1   : > { %v1607_v27 = vpop.eup %1606 }
 0x2f2   : > { %v1609_v28 = vpop.eup %1608  ;;  %v731_v29 = vadd.f32 1.0, %v1607_v27 }
 0x2f3   : > { %v730_v30 = vadd.f32 1.0, %v1609_v28 }
 0x2f4   : > { %1610 = vrcp.f32 %v731_v29 }
 0x2f5   : > { %1612 = vrcp.f32 %v730_v30 }
 0x301   : > { %v1611_v31 = vpop.eup %1610 }
 0x302   : > { %v737_v32 = vmul.f32 2.0, %v1611_v31  ;;  %v1613_v36 = vpop.eup %1612 }
 0x303   : > { %v742_v48 = vmul.f32 %v1613_v36, %v1968_v0 }
 0x304   : > { %v1466_v35 = vadd.f32 -1.0, %v737_v32 }
 0x306   : > { %v741_v37 = vsel %vm550_vm1, %v1466_v35, %v1611_v31 }
 0x307   : > { %v743_v38 = vmul.f32 %v1613_v36, %v741_v37 }
 0x309   : > { %745 = vrot.lane.b32.xlu1 %v743_v38, %s1739_s22 }
 0x37b   : > { %v746_v49 = vpop.permute.xlu1 %745 }
 0x37c   : > { %v748_v50 = vadd.f32 %v746_v49, %v742_v48  ;;  %v494_v49 = vadd.f32 %v493_v61, %v1950_v34 }
 0x37e   : > { %1614 = vtanh.f32 %v748_v50  ;;  %v753_v51 = vsel %vm751_vm3, %v748_v50, %v1968_v0  ;;  %v2019_v0 = vpop.f32.mrf.mxu0 }
 0x380   : > { %v2021_v1 = vpop.f32.mrf.mxu0 }
 0x382   : > { %v2023_v2 = vpop.f32.mrf.mxu0 }
 0x38b   : > { %v1615_v53 = vpop.eup %1614 }
 0x38c   : > { %v750_v54 = vmul.f32 %v1615_v53, %v741_v37 }
 0x38e   : > { %v752_v55 = vsel %vm751_vm3, %v750_v54, %v1970_v3  ;;  %v2025_v3 = vpop.f32.mrf.mxu0 }
 0x38f   : > { %v757_v56 = vpack.c.bf16 %v752_v55, %v752_v55 }
 0x390   : > { %v2027_v4 = vpop.f32.mrf.mxu0 }
 0x391   : > { %759 = vrot.lane.b32.xlu1 %v757_v56, %s1739_s22 }
 0x392   : > { %v2029_v5 = vpop.f32.mrf.mxu0 }
 0x394   : > { %v2031_v6 = vpop.f32.mrf.mxu0 }
 0x403   : > { %v760_v57 = vpop.permute.xlu1 %759 }
 0x404   : > { %1467 = vmatmul.mubr.msk.bf16.vlgmr.msra.gmra.mxu0 %vm430_vm0, %v760_v57 }
 0x405   : > { %939 = vmatpush1.bf16.msra.mxu0 %v1856_v12  ;;  %962 = vmatprep.mubr.bf16.mxu0 %v1738_v10 }
 0x406   : > { %940 = vmatprep.subr.bf16.mxu0 %v1870_v14 }
 0x409   : > { %941 = vmatpush1.bf16.msra.mxu0 %v1878_v16 }
 0x40a   : > { %942 = vmatprep.subr.bf16.mxu0 %v1888_v18 }
 0x40d   : > { %943 = vmatpush1.bf16.msra.mxu0 %v1896_v20 }
 0x40e   : > { %944 = vmatprep.subr.bf16.mxu0 %v1906_v22 }
 0x411   : > { %945 = vmatpush1.bf16.msra.mxu0 %v1914_v24 }
 0x412   : > { %1104 = vmatprep.subr.bf16.mxu0 %v1846_v9 }
 0x4c4   : > { %v798_v8 = vpop.f32.mrf.mxu0 }
 0x4c5   : > { %v805_v13 = vadd.f32 %v798_v8, %v488_v7 }
 0x4c6   : > { %v800_v15 = vpop.f32.mrf.mxu0 }
 0x4c7   : > { %v806_v17 = vadd.f32 %v800_v15, %v490_v11  ;;  %v1468_v19 = vmul.f32 -1.442695, %v805_v13 }
 0x4c8   : > { %v802_v21 = vpop.f32.mrf.mxu0 }
 0x4c9   : > { %v1469_v23 = vmul.f32 -1.442695, %v806_v17 }
 0x4ca   : > { %v803_v25 = vpop.f32.mrf.mxu0 }
 0x4cb   : > { %1616 = vpow2.f32 %v1469_v23 }
 0x4cc   : > { %1618 = vpow2.f32 %v1468_v19 }
 0x4d8   : > { %v1617_v26 = vpop.eup %1616 }
 0x4d9   : > { %v1619_v27 = vpop.eup %1618  ;;  %v814_v28 = vadd.f32 1.0, %v1617_v26 }
 0x4da   : > { %v813_v29 = vadd.f32 1.0, %v1619_v27 }
 0x4db   : > { %1620 = vrcp.f32 %v814_v28 }
 0x4dc   : > { %1622 = vrcp.f32 %v813_v29 }
 0x4e8   : > { %v1621_v30 = vpop.eup %1620 }
 0x4e9   : > { %v820_v31 = vmul.f32 2.0, %v1621_v30  ;;  %v1623_v35 = vpop.eup %1622 }
 0x4ea   : > { %v825_v38 = vmul.f32 %v1623_v35, %v753_v51 }
 0x4eb   : > { %v1471_v32 = vadd.f32 -1.0, %v820_v31 }
 0x4ed   : > { %v824_v36 = vsel %vm550_vm1, %v1471_v32, %v1621_v30  ;;  %v498_v30 = vadd.f32 %v2017_v62, %v1948_v33  ;;  %v500_v32 = vadd.f32 %v2019_v0, %v1950_v34 }
 0x4ee   : > { %v826_v37 = vmul.f32 %v1623_v35, %v824_v36 }
 0x4f0   : > { %828 = vrot.lane.b32.xlu0 %v826_v37, %s1739_s22 }
 0x562   : > { %v829_v39 = vpop.permute.xlu0 %828 }
 0x563   : > { %v831_v40 = vadd.f32 %v829_v39, %v825_v38 }
 0x565   : > { %1624 = vtanh.f32 %v831_v40  ;;  %v836_v41 = vsel %vm834_vm4, %v831_v40, %v753_v51 }
 0x572   : > { %v1625_v42 = vpop.eup %1624 }
 0x573   : > { %v833_v43 = vmul.f32 %v1625_v42, %v824_v36 }
 0x575   : > { %v835_v44 = vsel %vm834_vm4, %v833_v43, %v752_v55 }
 0x576   : > { %v840_v45 = vpack.c.bf16 %v835_v44, %v835_v44 }
 0x578   : > { %842 = vrot.lane.b32.xlu1 %v840_v45, %s1739_s22 }
 0x5ea   : > { %v843_v46 = vpop.permute.xlu1 %842 }
 0x5eb   : > { %1472 = vmatmul.mubr.msk.bf16.vlgmr.msra.gmra.mxu1 %vm430_vm0, %v843_v46 }
 0x5ec   : > { %1022 = vmatpush1.bf16.msra.mxu1 %v1856_v12  ;;  %1045 = vmatprep.mubr.bf16.mxu1 %v1738_v10 }
 0x5ed   : > { %1023 = vmatprep.subr.bf16.mxu1 %v1870_v14 }
 0x5f0   : > { %1024 = vmatpush1.bf16.msra.mxu1 %v1878_v16 }
 0x5f1   : > { %1025 = vmatprep.subr.bf16.mxu1 %v1888_v18 }
 0x5f4   : > { %1026 = vmatpush1.bf16.msra.mxu1 %v1896_v20 }
 0x5f5   : > { %1027 = vmatprep.subr.bf16.mxu1 %v1906_v22 }
 0x5f8   : > { %1028 = vmatpush1.bf16.msra.mxu1 %v1914_v24 }
 0x5f9   : > { %1187 = vmatprep.subr.bf16.mxu1 %v1846_v9 }
 0x6ab   : > { %v881_v48 = vpop.f32.mrf.mxu1 }
 0x6ac   : > { %v888_v50 = vadd.f32 %v881_v48, %v492_v47 }
 0x6ad   : > { %v883_v51 = vpop.f32.mrf.mxu1 }
 0x6ae   : > { %v889_v53 = vadd.f32 %v883_v51, %v494_v49  ;;  %v1473_v54 = vmul.f32 -1.442695, %v888_v50 }
 0x6af   : > { %v885_v55 = vpop.f32.mrf.mxu1 }
 0x6b0   : > { %v1474_v56 = vmul.f32 -1.442695, %v889_v53 }
 0x6b1   : > { %v886_v57 = vpop.f32.mrf.mxu1 }
 0x6b2   : > { %1626 = vpow2.f32 %v1474_v56 }
 0x6b3   : > { %1628 = vpow2.f32 %v1473_v54 }
 0x6bf   : > { %v1627_v58 = vpop.eup %1626 }
 0x6c0   : > { %v1629_v59 = vpop.eup %1628  ;;  %v897_v7 = vadd.f32 1.0, %v1627_v58 }
 0x6c1   : > { %v896_v8 = vadd.f32 1.0, %v1629_v59 }
 0x6c2   : > { %1630 = vrcp.f32 %v897_v7  ;;  %v502_v7 = vadd.f32 %v2021_v1, %v1948_v33 }
 0x6c3   : > { %1632 = vrcp.f32 %v896_v8 }
 0x6cf   : > { %v1631_v9 = vpop.eup %1630 }
 0x6d0   : > { %v903_v60 = vmul.f32 2.0, %v1631_v9  ;;  %v1633_v13 = vpop.eup %1632 }
 0x6d1   : > { %v908_v17 = vmul.f32 %v1633_v13, %v836_v41 }
 0x6d2   : > { %v1476_v11 = vadd.f32 -1.0, %v903_v60 }
 0x6d4   : > { %v907_v61 = vsel %vm550_vm1, %v1476_v11, %v1631_v9 }
 0x6d5   : > { %v909_v15 = vmul.f32 %v1633_v13, %v907_v61 }
 0x6d7   : > { %911 = vrot.lane.b32.xlu0 %v909_v15, %s1739_s22 }
 0x749   : > { %v912_v19 = vpop.permute.xlu0 %911 }
 0x74a   : > { %v914_v21 = vadd.f32 %v912_v19, %v908_v17 }
 0x74c   : > { %1634 = vtanh.f32 %v914_v21  ;;  %v919_v23 = vsel %vm917_vm5, %v914_v21, %v836_v41 }
 0x759   : > { %v1635_v25 = vpop.eup %1634 }
 0x75a   : > { %v916_v26 = vmul.f32 %v1635_v25, %v907_v61 }
 0x75c   : > { %v918_v27 = vsel %vm917_vm5, %v916_v26, %v835_v44 }
 0x75d   : > { %v923_v28 = vpack.c.bf16 %v918_v27, %v918_v27 }
 0x75f   : > { %925 = vrot.lane.b32.xlu1 %v923_v28, %s1739_s22 }
 0x7d1   : > { %v926_v29 = vpop.permute.xlu1 %925 }
 0x7d2   : > { %1477 = vmatmul.mubr.msk.bf16.vlgmr.msra.gmra.mxu0 %vm430_vm0, %v926_v29 }
 0x7d3   : > { %1105 = vmatpush1.bf16.msra.mxu0 %v1856_v12  ;;  %1128 = vmatprep.mubr.bf16.mxu0 %v1738_v10 }
 0x7d4   : > { %1106 = vmatprep.subr.bf16.mxu0 %v1870_v14 }
 0x7d7   : > { %1107 = vmatpush1.bf16.msra.mxu0 %v1878_v16 }
 0x7d8   : > { %1108 = vmatprep.subr.bf16.mxu0 %v1888_v18 }
 0x7db   : > { %1109 = vmatpush1.bf16.msra.mxu0 %v1896_v20 }
 0x7dc   : > { %1110 = vmatprep.subr.bf16.mxu0 %v1906_v22 }
 0x7df   : > { %1111 = vmatpush1.bf16.msra.mxu0 %v1914_v24 }
 0x892   : > { %v964_v31 = vpop.f32.mrf.mxu0 }
 0x893   : > { %v971_v35 = vadd.f32 %v964_v31, %v498_v30 }
 0x894   : > { %v966_v36 = vpop.f32.mrf.mxu0 }
 0x895   : > { %v972_v37 = vadd.f32 %v966_v36, %v500_v32  ;;  %v1478_v38 = vmul.f32 -1.442695, %v971_v35  ;;  %v508_v32 = vadd.f32 %v2025_v3, %v1948_v33  ;;  %v510_v36 = vadd.f32 %v2027_v4, %v1950_v34 }
 0x896   : > { %v968_v39 = vpop.f32.mrf.mxu0 }
 0x897   : > { %v1479_v40 = vmul.f32 -1.442695, %v972_v37 }
 0x898   : > { %v969_v41 = vpop.f32.mrf.mxu0 }
 0x899   : > { %1636 = vpow2.f32 %v1479_v40 }
 0x89a   : > { %1638 = vpow2.f32 %v1478_v38 }
 0x8a6   : > { %v1637_v42 = vpop.eup %1636 }
 0x8a7   : > { %v1639_v43 = vpop.eup %1638  ;;  %v980_v44 = vadd.f32 1.0, %v1637_v42 }
 0x8a8   : > { %v979_v45 = vadd.f32 1.0, %v1639_v43 }
 0x8a9   : > { %1640 = vrcp.f32 %v980_v44 }
 0x8aa   : > { %1642 = vrcp.f32 %v979_v45 }
 0x8b6   : > { %v1641_v62 = vpop.eup %1640 }
 0x8b7   : > { %v986_v46 = vmul.f32 2.0, %v1641_v62  ;;  %v1643_v48 = vpop.eup %1642 }
 0x8b8   : > { %v991_v50 = vmul.f32 %v1643_v48, %v919_v23 }
 0x8b9   : > { %v1481_v47 = vadd.f32 -1.0, %v986_v46 }
 0x8bb   : > { %v990_v0 = vsel %vm550_vm1, %v1481_v47, %v1641_v62 }
 0x8bc   : > { %v992_v49 = vmul.f32 %v1643_v48, %v990_v0 }
 0x8be   : > { %994 = vrot.lane.b32.xlu0 %v992_v49, %s1739_s22 }
 0x930   : > { %v995_v51 = vpop.permute.xlu0 %994 }
 0x931   : > { %v997_v53 = vadd.f32 %v995_v51, %v991_v50 }
 0x933   : > { %1644 = vtanh.f32 %v997_v53  ;;  %v1002_v54 = vsel %vm1000_vm6, %v997_v53, %v919_v23 }
 0x940   : > { %v1645_v55 = vpop.eup %1644 }
 0x941   : > { %v999_v56 = vmul.f32 %v1645_v55, %v990_v0 }
 0x943   : > { %v1001_v57 = vsel %vm1000_vm6, %v999_v56, %v918_v27 }
 0x944   : > { %v1006_v58 = vpack.c.bf16 %v1001_v57, %v1001_v57 }
 0x946   : > { %1008 = vrot.lane.b32.xlu1 %v1006_v58, %s1739_s22 }
 0x9b8   : > { %v1009_v59 = vpop.permute.xlu1 %1008 }
 0x9b9   : > { %1482 = vmatmul.mubr.msk.bf16.vlgmr.msra.gmra.mxu1 %vm430_vm0, %v1009_v59 }
 0x9ba   : > { %1188 = vmatpush1.bf16.msra.mxu1 %v1856_v12  ;;  %1211 = vmatprep.mubr.bf16.mxu1 %v1738_v10  ;;  %v504_v12 = vadd.f32 %v2023_v2, %v1950_v34 }
 0x9bb   : > { %1189 = vmatprep.subr.bf16.mxu1 %v1870_v14 }
 0x9be   : > { %1190 = vmatpush1.bf16.msra.mxu1 %v1878_v16 }
 0x9bf   : > { %1191 = vmatprep.subr.bf16.mxu1 %v1888_v18 }
 0x9c2   : > { %1192 = vmatpush1.bf16.msra.mxu1 %v1896_v20 }
 0x9c3   : > { %1193 = vmatprep.subr.bf16.mxu1 %v1906_v22 }
 0x9c6   : > { %1194 = vmatpush1.bf16.msra.mxu1 %v1914_v24 }
 0xa79   : > { %v1047_v8 = vpop.f32.mrf.mxu1 }
 0xa7a   : > { %v1054_v10 = vadd.f32 %v1047_v8, %v502_v7  ;;  %v512_v7 = vadd.f32 %v2029_v5, %v1948_v33 }
 0xa7b   : > { %v1049_v9 = vpop.f32.mrf.mxu1 }
 0xa7c   : > { %v1055_v14 = vadd.f32 %v1049_v9, %v504_v12  ;;  %v1483_v60 = vmul.f32 -1.442695, %v1054_v10  ;;  %v514_v12 = vadd.f32 %v2031_v6, %v1950_v34 }
 0xa7d   : > { %v1051_v16 = vpop.f32.mrf.mxu1 }
 0xa7e   : > { %v1484_v11 = vmul.f32 -1.442695, %v1055_v14 }
 0xa7f   : > { %v1052_v18 = vpop.f32.mrf.mxu1 }
 0xa80   : > { %1646 = vpow2.f32 %v1484_v11 }
 0xa81   : > { %1648 = vpow2.f32 %v1483_v60 }
 0xa8d   : > { %v1647_v20 = vpop.eup %1646 }
 0xa8e   : > { %v1649_v22 = vpop.eup %1648  ;;  %v1063_v13 = vadd.f32 1.0, %v1647_v20 }
 0xa8f   : > { %v1062_v24 = vadd.f32 1.0, %v1649_v22 }
 0xa90   : > { %1650 = vrcp.f32 %v1063_v13 }
 0xa91   : > { %1652 = vrcp.f32 %v1062_v24 }
 0xa9d   : > { %v1651_v1 = vpop.eup %1650 }
 0xa9e   : > { %v1069_v61 = vmul.f32 2.0, %v1651_v1  ;;  %v1653_v17 = vpop.eup %1652 }
 0xa9f   : > { %v1074_v21 = vmul.f32 %v1653_v17, %v1002_v54 }
 0xaa0   : > { %v1486_v15 = vadd.f32 -1.0, %v1069_v61 }
 0xaa2   : > { %v1073_v2 = vsel %vm550_vm1, %v1486_v15, %v1651_v1 }
 0xaa3   : > { %v1075_v19 = vmul.f32 %v1653_v17, %v1073_v2  ;;  %v1592_v17 = vld [vmem:[%s2183_s5 + $0x18] sm:$0xff]  }
 0xaa5   : > { %1077 = vrot.lane.b32.xlu0 %v1075_v19, %s1739_s22  ;;  %v1593_v19 = vld [vmem:[%s2183_s5 + $0x10] sm:$0xff]  }
 0xb17   : > { %v1078_v23 = vpop.permute.xlu0 %1077 }
 0xb18   : > { %v1080_v25 = vadd.f32 %v1078_v23, %v1074_v21  ;;  %v1595_v21 = vld [vmem:[%s2183_s5] sm:$0xff]  }
 0xb1a   : > { %1654 = vtanh.f32 %v1080_v25  ;;  %v1085_v26 = vsel %vm1083_vm7, %v1080_v25, %v1002_v54 }
 0xb27   : > { %v1655_v27 = vpop.eup %1654 }
 0xb28   : > { %v1082_v28 = vmul.f32 %v1655_v27, %v1073_v2  ;;  %v1740_v2 = vmov 0.0  }
 0xb29   : > { %1512 = vmatprep.subr.bf16.mxu0 %v1740_v2 }
 0xb2a   : > { %v1084_v29 = vsel %vm1083_vm7, %v1082_v28, %v1001_v57 }
 0xb2b   : > { %v1089_v30 = vpack.c.bf16 %v1084_v29, %v1084_v29 }
 0xb2d   : > { %1091 = vrot.lane.b32.xlu1 %v1089_v30, %s1739_s22 }
 0xb9f   : > { %v1092_v31 = vpop.permute.xlu1 %1091 }
 0xba0   : > { %1487 = vmatmul.mubr.msk.bf16.vlgmr.msra.gmra.mxu0 %vm430_vm0, %v1092_v31  ;;  %v1497_v31 = vld [vmem:[%s2184_s6] ss:$0 sm:$0xff] }
 0xba1   : > { %1520 = vmatprep.mubr.msk.bf16.mxu0 %vm1741_vm9, %v1740_v2  ;;  %1513 = vmatpush3.bf16.msra.mxu0 %v1592_v17 }
 0xba2   : > { %1514 = vmatprep.subr.bf16.mxu0 %v1740_v2 }
 0xba5   : > { %1515 = vmatpush3.bf16.msra.mxu0 %v1593_v19 }
 0xba6   : > { %1516 = vmatprep.subr.bf16.mxu0 %v1740_v2 }
 0xba9   : > { %1517 = vmatpush3.bf16.msra.mxu0 %v1594_v52 }
 0xbaa   : > { %1518 = vmatprep.subr.bf16.mxu0 %v1740_v2 }
 0xbad   : > { %1519 = vmatpush3.bf16.msra.mxu0 %v1595_v21 }
 0xc60   : > { %v1130_v35 = vpop.f32.mrf.mxu0 }
 0xc61   : > { %v1137_v37 = vadd.f32 %v1130_v35, %v508_v32 }
 0xc62   : > { %v1132_v38 = vpop.f32.mrf.mxu0 }
 0xc63   : > { %v1138_v39 = vadd.f32 %v1132_v38, %v510_v36  ;;  %v1488_v40 = vmul.f32 -1.442695, %v1137_v37 }
 0xc64   : > { %v1134_v41 = vpop.f32.mrf.mxu0 }
 0xc65   : > { %v1489_v42 = vmul.f32 -1.442695, %v1138_v39 }
 0xc66   : > { %v1135_v43 = vpop.f32.mrf.mxu0 }
 0xc67   : > { %1656 = vpow2.f32 %v1489_v42 }
 0xc68   : > { %1658 = vpow2.f32 %v1488_v40 }
 0xc74   : > { %v1657_v44 = vpop.eup %1656 }
 0xc75   : > { %v1659_v45 = vpop.eup %1658  ;;  %v1146_v62 = vadd.f32 1.0, %v1657_v44 }
 0xc76   : > { %v1145_v46 = vadd.f32 1.0, %v1659_v45 }
 0xc77   : > { %1660 = vrcp.f32 %v1146_v62 }
 0xc78   : > { %1662 = vrcp.f32 %v1145_v46 }
 0xc84   : > { %v1661_v3 = vpop.eup %1660 }
 0xc85   : > { %v1152_v47 = vmul.f32 2.0, %v1661_v3  ;;  %v1663_v0 = vpop.eup %1662 }
 0xc86   : > { %v1157_v50 = vmul.f32 %v1663_v0, %v1085_v26 }
 0xc87   : > { %v1491_v48 = vadd.f32 -1.0, %v1152_v47 }
 0xc89   : > { %v1156_v4 = vsel %vm550_vm1, %v1491_v48, %v1661_v3 }
 0xc8a   : > { %v1158_v49 = vmul.f32 %v1663_v0, %v1156_v4 }
 0xc8c   : > { %1160 = vrot.lane.b32.xlu0 %v1158_v49, %s1739_s22 }
 0xcfe   : > { %v1161_v51 = vpop.permute.xlu0 %1160 }
 0xcff   : > { %v1163_v53 = vadd.f32 %v1161_v51, %v1157_v50 }
 0xd01   : > { %1664 = vtanh.f32 %v1163_v53  ;;  %v1168_v54 = vsel %vm1166_vm8, %v1163_v53, %v1085_v26 }
 0xd0e   : > { %v1665_v55 = vpop.eup %1664 }
 0xd0f   : > { %v1165_v56 = vmul.f32 %v1665_v55, %v1156_v4 }
 0xd11   : > { %v1167_v57 = vsel %vm1166_vm8, %v1165_v56, %v1084_v29 }
 0xd12   : > { %v1172_v58 = vpack.c.bf16 %v1167_v57, %v1167_v57 }
 0xd14   : > { %1174 = vrot.lane.b32.xlu1 %v1172_v58, %s1739_s22 }
 0xd86   : > { %v1175_v59 = vpop.permute.xlu1 %1174 }
 0xd87   : > { %1492 = vmatmul.mubr.msk.bf16.vlgmr.msra.gmra.mxu1 %vm430_vm0, %v1175_v59 }
 0xe47   : > { %v1213_v8 = vpop.f32.mrf.mxu1 }
 0xe48   : > { %v1220_v10 = vadd.f32 %v1213_v8, %v512_v7 }
 0xe49   : > { %v1215_v9 = vpop.f32.mrf.mxu1 }
 0xe4a   : > { %v1493_v14 = vmul.f32 -1.442695, %v1220_v10  ;;  %v1221_v60 = vadd.f32 %v1215_v9, %v514_v12 }
 0xe4b   : > { %v1217_v16 = vpop.f32.mrf.mxu1 }
 0xe4c   : > { %1666 = vpow2.f32 %v1493_v14  ;;  %v1494_v11 = vmul.f32 -1.442695, %v1221_v60 }
 0xe4d   : > { %v1218_v18 = vpop.f32.mrf.mxu1 }
 0xe4e   : > { %1668 = vpow2.f32 %v1494_v11 }
 0xe59   : > { %v1667_v20 = vpop.eup %1666 }
 0xe5a   : > { %v1228_v22 = vadd.f32 1.0, %v1667_v20 }
 0xe5b   : > { %v1669_v13 = vpop.eup %1668 }
 0xe5c   : > { %1670 = vrcp.f32 %v1228_v22  ;;  %v1229_v24 = vadd.f32 1.0, %v1669_v13 }
 0xe5e   : > { %1672 = vrcp.f32 %v1229_v24 }
 0xe69   : > { %v1671_v33 = vpop.eup %1670 }
 0xe6a   : > { %v1240_v5 = vmul.f32 %v1671_v33, %v1168_v54 }
 0xe6b   : > { %v1673_v1 = vpop.eup %1672 }
 0xe6c   : > { %v1235_v61 = vmul.f32 2.0, %v1673_v1 }
 0xe6e   : > { %v1496_v34 = vadd.f32 -1.0, %v1235_v61 }
 0xe70   : > { %v1239_v6 = vsel %vm550_vm1, %v1496_v34, %v1673_v1 }
 0xe71   : > { %v1241_v15 = vmul.f32 %v1671_v33, %v1239_v6 }
 0xe73   : > { %1243 = vrot.lane.b32.xlu0 %v1241_v15, %s1739_s22 }
 0xee5   : > { %v1244_v23 = vpop.permute.xlu0 %1243 }
 0xee6   : > { %v1246_v25 = vadd.f32 %v1244_v23, %v1240_v5 }
 0xee8   : > { %1674 = vtanh.f32 %v1246_v25 }
 0xef5   : > { %v1675_v26 = vpop.eup %1674 }
 0xef6   : > { %v1248_v27 = vmul.f32 %v1675_v26, %v1239_v6 }
 0xef8   : > { %v1250_v28 = vsel %vm1249_vm10, %v1248_v27, %v1167_v57 }
 0xef9   : > { %v1251_v29 = vpack.c.bf16 %v1250_v28, %v1250_v28 }
 0xefb   : > { %1268 = vrot.lane.b32.xlu1 %v1251_v29, %s1739_s22  ;;  %s1339_s22 = scalar_lea.sflag [#allocation5], %s1859_s14 }
 0xf6d   : > { %v1269_v30 = vpop.permute.xlu1 %1268 }
 0xf6e   : > { %1521 = vmatmul.mubr.msk.bf16.vlgmr.msra.gmra.mxu0 %vm430_vm0, %v1269_v30 }
0x102e   : > { %v1331_v32 = vpop.f32.mrf.mxu0 }
0x102f   : > { %v1332_v35 = vadd.f32 %v1497_v31, %v1331_v32 }
0x1030   : > { %v1522_v63 = vpop.f32.mrf.mxu0 }
0x1031   : > { %1337 = vst.msk [vmem:[%s352_s29] sm:$0xff] %vm430_vm0, %v1332_v35 }
0x1032   : > { %v1334_v36 = vpop.f32.mrf.mxu0 }
0x1033   : > { %1689 = shalt.err (!%p1686_p7)
}
0x1034   : > { %s1690_s18 = scalar_lea.hbm %s2134_s15, 128  ;;  %s1694_s20 = scalar_lea.hbm %s2185_s7, 256 }
0x1035   : > { %p1691_p10 = scmp.ne.s32.totalorder %s2134_s15, %s1690_s18  ;;  %p1695_p13 = scmp.lt.s32.totalorder %s2134_s15, %s2185_s7 }
0x1036   : > { %p1696_p0 = scmp.lt.s32.totalorder %s1694_s20, %s1690_s18 }
0x1037   : > { %p1692_p11 = pnand %p1691_p10, %p1822_p6 }
0x1038   : > { %p1697_p1 = por %p1696_p0, %p1695_p13 }
0x1039   : > { %p1693_p12 = pneg %p1692_p11 }
0x103b   : > { %p1698_p2 = pnand %p1697_p1, %p1693_p12 }
0x103d   : > { %1701 = shalt.err (!%p1698_p2)
}
0x103e   : > { %1524 = dma.vmem_to_hbm [thread:$0]  (%p1822_p6), %s2136_s8, 128, %s2134_s15, %s1339_s22   ;;  %v1523_v37 = vpop.f32.mrf.mxu0 }
0x103f PF: > { %s1364_s9 = sand.u32 1, %s1724_s24   ;;  %p1527_p3 = pnand %p1431_p9, %p1826_p8 }
0x1040   : > { %s1365_s13 = scalar_lea.sflag [#allocation5], %s1364_s9 }
0x1041   : > { %p1528_p4 = pneg %p1527_p3 }
0x1043   : > { %1719 = dma.done.wait (%p1528_p4), %s1365_s13, 128  }
0x1044   : > { %1721 = vsyncadd (%p1528_p4), %s1365_s13, 4294967168  ;;  %p17_p5 = scmp.ge.s32.totalorder %s1808_s30, 4   ;;  %s2188_s24 = smov %s1728_s25 }
0x1045   : > { %s2189_s25 = smov %s1732_s26  ;;  %s2190_s26 = smov %s1820_s10 }
0x1046   : > { %s2191_s27 = smov %s1808_s30  ;;  %19 = sbr.rel (!%p17_p5) target bundleno = 3 (0x3), region = 136 }
0x104b   :  { %1370 = vsyncpa [#allocation5], 1 }
0x104c   :  { %1372 = vsyncpa [#allocation5 + $0x1], 1 }

</bundles_post_ra>
